<compile_context>
chip_gen: v5e
topology: v5e:2x2
jax: 0.10.0
libtpu: 0.0.40
codegen_flags: <defaults>
</compile_context>

<pallas_src>
import jax
import jax.numpy as jnp
from jax import lax
from jax.experimental import pallas as pl
from jax.experimental.pallas import tpu as pltpu


def _conv_shuffle_prelu_kernel(x_ref, w_ref, b_ref, alpha_ref, o_ref):
    """One (batch, H-strip) grid step.

    x_ref:     (1, 1, hs+2, Cin*Wp)  padded input rows for this strip (1-row halo
                                     top/bottom); row layout = (ci, wp) flattened.
    w_ref:     (3, Cin*Wp, Ncols)    block-Toeplitz conv weights, one slab per ky;
                                     columns permuted to (c, ry, w, rx).
    b_ref:     (1, Ncols)            bias in the same column order (f32, VMEM).
    alpha_ref: (1,)                  PReLU shared alpha (f32, SMEM).
    o_ref:     (1, C, hs, r*W*r)     pixel-shuffled NCHW output rows (f32).
    """
    C = o_ref.shape[1]
    hs = o_ref.shape[2]
    rwr = o_ref.shape[3]          # r * W * r  (per-channel chunk per output row-group)
    ncols = w_ref.shape[2]        # W * Cout   (lane-dense matmul width)

    # 3 accumulating MXU matmuls (one per kernel row ky); K = Cin*(W+2).
    acc = jnp.zeros((hs, ncols), dtype=jnp.float32)
    for ky in range(3):
        acc += jnp.dot(x_ref[0, 0, ky:ky + hs, :], w_ref[ky],
                       preferred_element_type=jnp.float32)

    acc += b_ref[...]                               # (1, Ncols) broadcasts over rows
    alpha = alpha_ref[0]                            # scalar from SMEM
    acc = jnp.where(acc >= 0, acc, alpha * acc)     # PReLU, shared alpha, f32 epilogue

    # Columns are (c, ry, w, rx): chunk c is contiguous and is exactly the
    # pixel-shuffled output rows of channel c for this strip.
    for c in range(C):
        o_ref[0, c, :, :] = acc[:, c * rwr:(c + 1) * rwr].astype(o_ref.dtype)


def _pick_strip_h(H, in_row_bytes, out_row_bytes, vmem_budget=8 << 20):
    """Largest strip height dividing H (multiple of 8, or H itself) whose
    double-buffered input + output strips fit the VMEM budget."""
    cands = [h for h in range(H, 0, -1) if H % h == 0 and (h % 8 == 0 or h == H)]
    for hs in cands:
        need = 2 * ((hs + 2) * in_row_bytes + hs * out_row_bytes)
        if need <= vmem_budget:
            return hs
    return cands[-1]


def upsample_forward(x, weight, bias, alpha, up_factor,
                     compute_dtype=jnp.bfloat16, strip_h=None):
    """Conv2d(Cin, Cin*r^2, 3, stride 1, pad 1) -> PixelShuffle(r) -> PReLU(alpha).

    x: (N, Cin, H, W) NCHW f32; weight: (Cout, Cin, 3, 3); bias: (Cout,);
    alpha: scalar (nn.PReLU() single shared parameter).
    Returns (N, Cin, H*r, W*r) NCHW f32.
    """
    N, Cin, H, W = x.shape
    r = int(up_factor)
    C = Cin
    Cout = C * r * r
    assert weight.shape == (Cout, Cin, 3, 3)
    # TODO(synk): per-channel PReLU (num_parameters=Cout) would need a per-column
    # alpha row (channels are permuted by the fused shuffle); the module uses the
    # default single shared alpha, which commutes with the permutation.

    Wp = W + 2
    K = Cin * Wp                 # contraction size per ky slab
    Wr = W * r
    rwr = r * Wr                 # per-channel chunk of one output row-group
    ncols = C * rwr              # == W * Cout, lane-dense matmul width

    # ---- strip height: biggest divisor of H whose buffers fit the VMEM budget ----
    if strip_h is None:
        itemsize = jnp.dtype(compute_dtype).itemsize
        hs = _pick_strip_h(H, K * itemsize, 2 * ncols * 4)
    else:
        hs = int(strip_h)
    assert H % hs == 0 and (hs % 8 == 0 or hs == H), \
        "strip height must divide H and be a multiple of 8 (or equal H)"
    S = H // hs

    # ---- input pack: NCHW -> padded rows (N, Hp, Cin*Wp) -> halo'd strips --------
    # Single layout pass; halo duplication is 2 rows per strip.
    xr = jnp.transpose(x, (0, 2, 1, 3))                        # (N, H, Cin, W)
    xr = jnp.pad(xr, ((0, 0), (1, 1), (0, 0), (1, 1)))         # (N, Hp, Cin, Wp)
    xr = xr.reshape(N, H + 2, K).astype(compute_dtype)         # row = (ci, wp) flat
    x_strips = jnp.stack(
        [xr[:, s * hs:s * hs + hs + 2, :] for s in range(S)], axis=1)  # (N,S,hs+2,K)

    # ---- weights: block-Toeplitz slabs, columns permuted to (c, ry, w, rx) -------
    w5 = weight.reshape(C, r, r, Cin, 3, 3).astype(jnp.float32)   # (c,ry,rx,ci,ky,kx)
    slabs = []
    for ky in range(3):
        slab = jnp.zeros((Cin, Wp, C, r, W, r), jnp.float32)
        for kx in range(3):
            shift = jnp.eye(Wp, W, k=-kx, dtype=jnp.float32)      # 1 where wp == w+kx
            slab = slab + jnp.einsum('pw,cyxi->ipcywx', shift, w5[..., ky, kx])
        slabs.append(slab.reshape(K, ncols))
    bigw = jnp.stack(slabs, axis=0).astype(compute_dtype)         # (3, K, Ncols)

    bias_cols = jnp.broadcast_to(
        bias.astype(jnp.float32).reshape(C, r, 1, r), (C, r, W, r)).reshape(1, ncols)
    alpha_arr = jnp.asarray(alpha, jnp.float32).reshape(1)

    out = pl.pallas_call(
        _conv_shuffle_prelu_kernel,
        out_shape=jax.ShapeDtypeStruct((N, C, H, rwr), jnp.float32),
        grid_spec=pltpu.PrefetchScalarGridSpec(
            num_scalar_prefetch=0,
            grid=(N, S),
            in_specs=[
                pl.BlockSpec((1, 1, hs + 2, K), lambda n, s: (n, s, 0, 0)),
                pl.BlockSpec((3, K, ncols), lambda n, s: (0, 0, 0)),
                pl.BlockSpec((1, ncols), lambda n, s: (0, 0)),
                pl.BlockSpec(memory_space=pltpu.MemorySpace.SMEM),   # alpha scalar
            ],
            out_specs=pl.BlockSpec((1, C, hs, rwr), lambda n, s: (n, 0, s, 0)),
        ),
        compiler_params=pltpu.CompilerParams(
            dimension_semantics=("parallel", "parallel"),
            vmem_limit_bytes=32 * 1024 * 1024,
        ),
    )(x_strips, bigw, bias_cols, alpha_arr)

    # Free, layout-preserving reshape: (N, C, H, r*W*r) -> (N, C, H*r, W*r).
    return out.reshape(N, C, H * r, W * r)


# ----------------------------- reference / self-test -----------------------------
def pixel_shuffle_nchw(x, r):
    N, Crr, H, W = x.shape
    C = Crr // (r * r)
    x = x.reshape(N, C, r, r, H, W)
    x = jnp.transpose(x, (0, 1, 4, 2, 5, 3))
    return x.reshape(N, C, H * r, W * r)


def _reference(x, weight, bias, alpha, r, operand_dtype, precision=None):
    conv = lax.conv_general_dilated(
        x.astype(operand_dtype), weight.astype(operand_dtype),
        window_strides=(1, 1), padding=((1, 1), (1, 1)),
        dimension_numbers=("NCHW", "OIHW", "NCHW"),
        preferred_element_type=jnp.float32, precision=precision)
    conv = conv + bias.astype(jnp.float32)[None, :, None, None]
    out = pixel_shuffle_nchw(conv, r)
    return jnp.where(out >= 0, out, jnp.float32(alpha) * out)


if __name__ == "__main__":
    key = jax.random.PRNGKey(0)
    N, Cin, H, W = 2, 4, 16, 16
    up_factor = 2
    Cout = Cin * up_factor ** 2

    kx_, kw_, kb_ = jax.random.split(key, 3)
    x = jax.random.normal(kx_, (N, Cin, H, W), dtype=jnp.float32)
    fan_in = Cin * 3 * 3
    bound = 1.0 / (fan_in ** 0.5)
    weight = jax.random.uniform(kw_, (Cout, Cin, 3, 3), jnp.float32, -bound, bound)
    bias = jax.random.uniform(kb_, (Cout,), jnp.float32, -bound, bound)
    alpha = jnp.float32(0.25)   # PReLU default init

    fwd = jax.jit(upsample_forward,
                  static_argnames=("up_factor", "compute_dtype", "strip_h"))

    # 1) bf16 MXU path, auto strip height (single strip at this size).
    out_a = jax.block_until_ready(fwd(x, weight, bias, alpha, up_factor=up_factor))
    assert out_a.shape == (N, Cin, H * up_factor, W * up_factor)
    ref_bf16 = _reference(x, weight, bias, alpha, up_factor, jnp.bfloat16)
    assert jnp.allclose(out_a, ref_bf16, atol=2e-3, rtol=2e-3)

    # 2) bf16 path with forced H-strip tiling (exercises the multi-strip grid).
    out_b = jax.block_until_ready(
        fwd(x, weight, bias, alpha, up_factor=up_factor, strip_h=8))
    assert jnp.allclose(out_b, ref_bf16, atol=2e-3, rtol=2e-3)

    # 3) f32 operand path, multi-strip, vs high-precision f32 reference.
    out_c = jax.block_until_ready(
        fwd(x, weight, bias, alpha, up_factor=up_factor,
            compute_dtype=jnp.float32, strip_h=8))
    ref_f32 = _reference(x, weight, bias, alpha, up_factor, jnp.float32,
                         precision=lax.Precision.HIGHEST)
    assert jnp.allclose(out_c, ref_f32, atol=2e-2, rtol=2e-2)

    # bf16 path is also close to the exact f32 reference (semantic sanity).
    assert jnp.allclose(out_a, ref_f32, atol=3e-2, rtol=3e-2)

    print("KERNEL_OK")
</pallas_src>

<mosaic_0001>
module attributes {stable_mosaic.version = 11 : i64} {
  func.func @_conv_shuffle_prelu_kernel(%arg0: i32, %arg1: i32, %arg2: memref<1x1x18x72xbf16, #tpu.memory_space<vmem>>, %arg3: memref<3x72x256xbf16, #tpu.memory_space<vmem>>, %arg4: memref<1x256xf32, #tpu.memory_space<vmem>>, %arg5: memref<1xf32, #tpu.memory_space<smem>>, %arg6: memref<1x4x16x64xf32, #tpu.memory_space<vmem>>) attributes {dimension_semantics = [#tpu.dimension_semantics<parallel>, #tpu.dimension_semantics<parallel>], iteration_bounds = array<i64: 2, 1>, scalar_prefetch = 0 : i64, scratch_operands = 0 : i64, tpu.core_type = #tpu.core_type<tc>, window_params = [{transform_indices = @transform_0, window_bounds = array<i64: 1, 1, 18, 72>}, {pipeline_mode = #tpu.pipeline_mode<synchronous>, transform_indices = @transform_1, window_bounds = array<i64: 3, 72, 256>}, {pipeline_mode = #tpu.pipeline_mode<synchronous>, transform_indices = @transform_2, window_bounds = array<i64: 1, 256>}, {transform_indices = @transform_3, window_bounds = array<i64: 1>}, {transform_indices = @transform_4, window_bounds = array<i64: 1, 4, 16, 64>}]} {
    %cst = arith.constant 0.000000e+00 : f32
    %0 = vector.broadcast %cst : f32 to vector<16x256xf32>
    %c0 = arith.constant 0 : index
    %c0_0 = arith.constant 0 : index
    %c0_1 = arith.constant 0 : index
    %c0_2 = arith.constant 0 : index
    %1 = vector.load %arg2[%c0, %c0_0, %c0_1, %c0_2] : memref<1x1x18x72xbf16, #tpu.memory_space<vmem>>, vector<1x1x16x72xbf16>
    %2 = vector.shape_cast %1 : vector<1x1x16x72xbf16> to vector<16x72xbf16>
    %c0_3 = arith.constant 0 : index
    %c0_4 = arith.constant 0 : index
    %c0_5 = arith.constant 0 : index
    %3 = vector.load %arg3[%c0_3, %c0_4, %c0_5] : memref<3x72x256xbf16, #tpu.memory_space<vmem>>, vector<1x72x256xbf16>
    %4 = vector.shape_cast %3 : vector<1x72x256xbf16> to vector<72x256xbf16>
    %cst_6 = arith.constant dense<0.000000e+00> : vector<16x256xf32>
    %5 = tpu.matmul %2, %4, %cst_6 {dimension_numbers = #tpu.dot_dimension_numbers<[1], [0], [0], [1], [0, 0, 1, 1], [], []>} : vector<16x72xbf16>, vector<72x256xbf16>, vector<16x256xf32> -> vector<16x256xf32>
    %6 = arith.addf %0, %5 : vector<16x256xf32>
    %c0_7 = arith.constant 0 : index
    %c0_8 = arith.constant 0 : index
    %c1 = arith.constant 1 : index
    %c0_9 = arith.constant 0 : index
    %7 = vector.load %arg2[%c0_7, %c0_8, %c1, %c0_9] : memref<1x1x18x72xbf16, #tpu.memory_space<vmem>>, vector<1x1x16x72xbf16>
    %8 = vector.shape_cast %7 : vector<1x1x16x72xbf16> to vector<16x72xbf16>
    %c1_10 = arith.constant 1 : index
    %c0_11 = arith.constant 0 : index
    %c0_12 = arith.constant 0 : index
    %9 = vector.load %arg3[%c1_10, %c0_11, %c0_12] : memref<3x72x256xbf16, #tpu.memory_space<vmem>>, vector<1x72x256xbf16>
    %10 = vector.shape_cast %9 : vector<1x72x256xbf16> to vector<72x256xbf16>
    %cst_13 = arith.constant dense<0.000000e+00> : vector<16x256xf32>
    %11 = tpu.matmul %8, %10, %cst_13 {dimension_numbers = #tpu.dot_dimension_numbers<[1], [0], [0], [1], [0, 0, 1, 1], [], []>} : vector<16x72xbf16>, vector<72x256xbf16>, vector<16x256xf32> -> vector<16x256xf32>
    %12 = arith.addf %6, %11 : vector<16x256xf32>
    %c0_14 = arith.constant 0 : index
    %c0_15 = arith.constant 0 : index
    %c2 = arith.constant 2 : index
    %c0_16 = arith.constant 0 : index
    %13 = vector.load %arg2[%c0_14, %c0_15, %c2, %c0_16] : memref<1x1x18x72xbf16, #tpu.memory_space<vmem>>, vector<1x1x16x72xbf16>
    %14 = vector.shape_cast %13 : vector<1x1x16x72xbf16> to vector<16x72xbf16>
    %c2_17 = arith.constant 2 : index
    %c0_18 = arith.constant 0 : index
    %c0_19 = arith.constant 0 : index
    %15 = vector.load %arg3[%c2_17, %c0_18, %c0_19] : memref<3x72x256xbf16, #tpu.memory_space<vmem>>, vector<1x72x256xbf16>
    %16 = vector.shape_cast %15 : vector<1x72x256xbf16> to vector<72x256xbf16>
    %cst_20 = arith.constant dense<0.000000e+00> : vector<16x256xf32>
    %17 = tpu.matmul %14, %16, %cst_20 {dimension_numbers = #tpu.dot_dimension_numbers<[1], [0], [0], [1], [0, 0, 1, 1], [], []>} : vector<16x72xbf16>, vector<72x256xbf16>, vector<16x256xf32> -> vector<16x256xf32>
    %18 = arith.addf %12, %17 : vector<16x256xf32>
    %c0_21 = arith.constant 0 : index
    %c0_22 = arith.constant 0 : index
    %19 = vector.load %arg4[%c0_21, %c0_22] : memref<1x256xf32, #tpu.memory_space<vmem>>, vector<1x256xf32>
    %20 = vector.broadcast %19 : vector<1x256xf32> to vector<16x256xf32>
    %21 = arith.addf %18, %20 : vector<16x256xf32>
    %c0_23 = arith.constant 0 : index
    %22 = memref.load %arg5[%c0_23] : memref<1xf32, #tpu.memory_space<smem>>
    %cst_24 = arith.constant 0.000000e+00 : f32
    %23 = vector.broadcast %cst_24 : f32 to vector<16x256xf32>
    %24 = arith.cmpf oge, %21, %23 : vector<16x256xf32>
    %25 = vector.broadcast %22 : f32 to vector<16x256xf32>
    %26 = arith.mulf %25, %21 : vector<16x256xf32>
    %27 = arith.select %24, %21, %26 : vector<16x256xi1>, vector<16x256xf32>
    %28 = vector.extract_strided_slice %27 {offsets = [0, 0], sizes = [16, 64], strides = [1, 1]} : vector<16x256xf32> to vector<16x64xf32>
    %c0_25 = arith.constant 0 : index
    %c0_26 = arith.constant 0 : index
    %c0_27 = arith.constant 0 : index
    %c0_28 = arith.constant 0 : index
    %29 = vector.load %arg6[%c0_25, %c0_26, %c0_27, %c0_28] : memref<1x4x16x64xf32, #tpu.memory_space<vmem>>, vector<1x1x16x64xf32>
    %30 = vector.shape_cast %29 : vector<1x1x16x64xf32> to vector<16x64xf32>
    %31 = vector.shape_cast %28 : vector<16x64xf32> to vector<1x1x16x64xf32>
    tpu.vector_store %arg6[%c0_25, %c0_26, %c0_27, %c0_28], %31 {strides = array<i32>} : memref<1x4x16x64xf32, #tpu.memory_space<vmem>>, vector<1x1x16x64xf32>,
    %32 = vector.extract_strided_slice %27 {offsets = [0, 64], sizes = [16, 64], strides = [1, 1]} : vector<16x256xf32> to vector<16x64xf32>
    %c0_29 = arith.constant 0 : index
    %c1_30 = arith.constant 1 : index
    %c0_31 = arith.constant 0 : index
    %c0_32 = arith.constant 0 : index
    %33 = vector.load %arg6[%c0_29, %c1_30, %c0_31, %c0_32] : memref<1x4x16x64xf32, #tpu.memory_space<vmem>>, vector<1x1x16x64xf32>
    %34 = vector.shape_cast %33 : vector<1x1x16x64xf32> to vector<16x64xf32>
    %35 = vector.shape_cast %32 : vector<16x64xf32> to vector<1x1x16x64xf32>
    tpu.vector_store %arg6[%c0_29, %c1_30, %c0_31, %c0_32], %35 {strides = array<i32>} : memref<1x4x16x64xf32, #tpu.memory_space<vmem>>, vector<1x1x16x64xf32>,
    %36 = vector.extract_strided_slice %27 {offsets = [0, 128], sizes = [16, 64], strides = [1, 1]} : vector<16x256xf32> to vector<16x64xf32>
    %c0_33 = arith.constant 0 : index
    %c2_34 = arith.constant 2 : index
    %c0_35 = arith.constant 0 : index
    %c0_36 = arith.constant 0 : index
    %37 = vector.load %arg6[%c0_33, %c2_34, %c0_35, %c0_36] : memref<1x4x16x64xf32, #tpu.memory_space<vmem>>, vector<1x1x16x64xf32>
    %38 = vector.shape_cast %37 : vector<1x1x16x64xf32> to vector<16x64xf32>
    %39 = vector.shape_cast %36 : vector<16x64xf32> to vector<1x1x16x64xf32>
    tpu.vector_store %arg6[%c0_33, %c2_34, %c0_35, %c0_36], %39 {strides = array<i32>} : memref<1x4x16x64xf32, #tpu.memory_space<vmem>>, vector<1x1x16x64xf32>,
    %40 = vector.extract_strided_slice %27 {offsets = [0, 192], sizes = [16, 64], strides = [1, 1]} : vector<16x256xf32> to vector<16x64xf32>
    %c0_37 = arith.constant 0 : index
    %c3 = arith.constant 3 : index
    %c0_38 = arith.constant 0 : index
    %c0_39 = arith.constant 0 : index
    %41 = vector.load %arg6[%c0_37, %c3, %c0_38, %c0_39] : memref<1x4x16x64xf32, #tpu.memory_space<vmem>>, vector<1x1x16x64xf32>
    %42 = vector.shape_cast %41 : vector<1x1x16x64xf32> to vector<16x64xf32>
    %43 = vector.shape_cast %40 : vector<16x64xf32> to vector<1x1x16x64xf32>
    tpu.vector_store %arg6[%c0_37, %c3, %c0_38, %c0_39], %43 {strides = array<i32>} : memref<1x4x16x64xf32, #tpu.memory_space<vmem>>, vector<1x1x16x64xf32>,
    return
  }
  func.func @transform_0(%arg0: i32, %arg1: i32) -> (i32, i32, i32, i32) {
    %c0_i32 = arith.constant 0 : i32
    %c0_i32_0 = arith.constant 0 : i32
    %c0_i32_1 = arith.constant 0 : i32
    return %arg0, %arg1, %c0_i32, %c0_i32_0 : i32, i32, i32, i32
  }
  func.func @transform_1(%arg0: i32, %arg1: i32) -> (i32, i32, i32) {
    %c0_i32 = arith.constant 0 : i32
    %c0_i32_0 = arith.constant 0 : i32
    %c0_i32_1 = arith.constant 0 : i32
    %c0_i32_2 = arith.constant 0 : i32
    return %c0_i32, %c0_i32_0, %c0_i32_1 : i32, i32, i32
  }
  func.func @transform_2(%arg0: i32, %arg1: i32) -> (i32, i32) {
    %c0_i32 = arith.constant 0 : i32
    %c0_i32_0 = arith.constant 0 : i32
    %c0_i32_1 = arith.constant 0 : i32
    return %c0_i32, %c0_i32_0 : i32, i32
  }
  func.func @transform_3(%arg0: i32, %arg1: i32) -> i32 {
    %c0_i32 = arith.constant 0 : i32
    %c0_i32_0 = arith.constant 0 : i32
    return %c0_i32 : i32
  }
  func.func @transform_4(%arg0: i32, %arg1: i32) -> (i32, i32, i32, i32) {
    %c0_i32 = arith.constant 0 : i32
    %c0_i32_0 = arith.constant 0 : i32
    %c0_i32_1 = arith.constant 0 : i32
    return %arg0, %c0_i32, %arg1, %c0_i32_0 : i32, i32, i32, i32
  }
}

</mosaic_0001>

<bundles_post_ra>
// kernel: upsample_forward.1
= control target key start
LH: loop header
LB: loop body
LE: loop exit
PB: predicated region body
PF: predicated region fallthrough
CT: control target
= control target key end

     0   :  { %s938_s17 = smov 0   ;;  %s940_s18 = smov 0   ;;  %s1173_s0 = inlined_call_operand.vmem [shape: bf16[2,1,18,72], index: 0, kind: input, shape index: {}]   ;;  %s1174_s1 = inlined_call_operand.vmem [shape: bf16[3,72,256], index: 1, kind: input, shape index: {}]   ;;  %s1175_s2 = inlined_call_operand.vmem [shape: f32[1,256], index: 2, kind: input, shape index: {}]   ;;  %s1176_s3 = inlined_call_operand.<no memory space> [shape: f32[1], index: 3, kind: input, shape index: {}]   ;;  %s1177_s4 = inlined_call_operand.vmem [shape: f32[2,4,16,64], index: 4, kind: output, shape index: {}]  }
   0x1   :  { %9 = sst [smem:[#allocation2]] %s1176_s3  ;;  %s942_s19 = smov 0  }
   0x2 LB: > { %s27_s3 = sadd.s32 1, %s903_s18  ;;  %p695_p0 = scmp.ge.s32.totalorder %s907_s19, 1  ;;  %s907_s19 = sphi %s942_s19, %s15_s19   ;;  %s903_s18 = sphi %s940_s18, %s1179_s18   ;;  %s899_s17 = sphi %s938_s17, %s1178_s17  }
   0x3   : > { %p29_p1 = scmp.ge.s32.totalorder %s27_s3, 2  ;;  %p183_p2 = scmp.lt.s32.totalorder %s907_s19, 3 }
   0x5   : > { %s1181_s3 = smov (%p29_p1, %s27_s3), 0  ;;  %p184_p3 = pnand %p695_p0, %p183_p2 }
   0x6   : > { %p217_p4 = scmp.lt.s32.totalorder (!%p184_p3), %s899_s17, 1 }
   0x7   : > { %187 = sbr.rel (%p184_p3) target bundleno = 315 (0x13b), region = 36 }
   0xc   : > { %v707_v0 = vld [vmem:[%s1174_s1 + $0x88] sm:$0xff]  ;;  %v247_v1 = vld [vmem:[%s1174_s1 + $0x40] sm:$0xff]  ;;  %vm329_vm0 = vcmask 1043456   ;;  %v734_v6 = vld [vmem:[%s1174_s1 + $0x78] sm:$0xf]  ;;  %s1183_s17 = smov (!%p217_p4, %s899_s17), 1 }
   0xd   : > { %v305_v2 = vunpack.c.l.b16 %v707_v0  ;;  %v306_v3 = vunpack.c.h.b16 %v707_v0  ;;  %v389_v4 = vunpack.c.l.b16 %v247_v1  ;;  %v390_v5 = vunpack.c.h.b16 %v247_v1  ;;  %v843_v7 = vld [vmem:[%s1174_s1 + $0x7c] sm:$0xf0]  ;;  %v842_v12 = vld [vmem:[%s1174_s1 + $0x7c] sm:$0xf]  ;;  %v736_v13 = vld [vmem:[%s1174_s1 + $0x80] sm:$0xf0] }
   0xe   : > { %v768_v14 = vld [vmem:[%s1174_s1 + $0x30] sm:$0xf]  ;;  %v835_v15 = vld [vmem:[%s1174_s1 + $0x34] sm:$0xf0]  ;;  %v834_v16 = vld [vmem:[%s1174_s1 + $0x34] sm:$0xf]  ;;  %v735_v22 = vor.u32 %v843_v7, %v734_v6  ;;  %v739_v23 = vor.u32 %v842_v12, %v736_v13 }
   0xf   : > { %v315_v8 = vpack.c.b16 %v305_v2, %v305_v2  ;;  %v316_v9 = vpack.c.b16 %v306_v3, %v306_v3  ;;  %v399_v10 = vpack.c.b16 %v389_v4, %v389_v4  ;;  %v400_v11 = vpack.c.b16 %v390_v5, %v390_v5  ;;  %v770_v17 = vld [vmem:[%s1174_s1 + $0x38] sm:$0xf0]  ;;  %v726_v24 = vld [vmem:[%s1174_s1 + $0x68] sm:$0xf]  ;;  %v841_v25 = vld [vmem:[%s1174_s1 + $0x6c] sm:$0xf0] }
  0x10   : > { %v769_v26 = vor.u32 %v835_v15, %v768_v14  ;;  %v773_v27 = vor.u32 %v834_v16, %v770_v17  ;;  %v840_v28 = vld [vmem:[%s1174_s1 + $0x6c] sm:$0xf]  ;;  %v728_v29 = vld [vmem:[%s1174_s1 + $0x70] sm:$0xf0]  ;;  %v760_v30 = vld [vmem:[%s1174_s1 + $0x20] sm:$0xf]  ;;  %v727_v34 = vor.u32 %v841_v25, %v726_v24 }
  0x11   : > { %v331_v18 = vsel %vm329_vm0, %v315_v8, 0  ;;  %v334_v19 = vsel %vm329_vm0, %v316_v9, 0  ;;  %v412_v20 = vsel %vm329_vm0, %v399_v10, 0  ;;  %v415_v21 = vsel %vm329_vm0, %v400_v11, 0  ;;  %v833_v31 = vld [vmem:[%s1174_s1 + $0x24] sm:$0xf0] }
  0x12   : > { %339 = vmatpush.bf16.msra.mxu0 %v331_v18  ;;  %353 = vmatpush.bf16.msra.mxu1 %v334_v19  ;;  %v832_v32 = vld [vmem:[%s1174_s1 + $0x24] sm:$0xf]  ;;  %v762_v33 = vld [vmem:[%s1174_s1 + $0x28] sm:$0xf0]  ;;  %v731_v35 = vor.u32 %v840_v28, %v728_v29  ;;  %v718_v36 = vld [vmem:[%s1174_s1 + $0x58] sm:$0xf]  ;;  %v761_v39 = vor.u32 %v833_v31, %v760_v30 }
  0x13   : > { %420 = vmatpush.bf16.msra.mxu2 %v412_v20  ;;  %434 = vmatpush.bf16.msra.mxu3 %v415_v21  ;;  %v839_v37 = vld [vmem:[%s1174_s1 + $0x5c] sm:$0xf0]  ;;  %v838_v38 = vld [vmem:[%s1174_s1 + $0x5c] sm:$0xf]  ;;  %v765_v40 = vor.u32 %v832_v32, %v762_v33  ;;  %v720_v41 = vld [vmem:[%s1174_s1 + $0x60] sm:$0xf0] }
  0x14   : > { %v752_v42 = vld [vmem:[%s1174_s1 + $0x10] sm:$0xf]  ;;  %v831_v43 = vld [vmem:[%s1174_s1 + $0x14] sm:$0xf0]  ;;  %v830_v44 = vld [vmem:[%s1174_s1 + $0x14] sm:$0xf]  ;;  %v719_v49 = vor.u32 %v839_v37, %v718_v36  ;;  %v723_v50 = vor.u32 %v838_v38, %v720_v41 }
  0x15   : > { %v754_v45 = vld [vmem:[%s1174_s1 + $0x18] sm:$0xf0]  ;;  %v784_v46 = vld [vmem:[%s1174_s1 + $0xd0] sm:$0xff]  ;;  %v710_v51 = vld [vmem:[%s1174_s1 + $0x48] sm:$0xf]  ;;  %s859_s6 = smul.u32 12, %s1183_s17  ;;  %v753_v53 = vor.u32 %v831_v43, %v752_v42 }
  0x16   : > { %340 = vmatpush.bf16.msra.mxu0 %v735_v22  ;;  %354 = vmatpush.bf16.msra.mxu1 %v739_v23  ;;  %v488_v47 = vunpack.c.l.b16 %v784_v46  ;;  %v489_v48 = vunpack.c.h.b16 %v784_v46  ;;  %v837_v52 = vld [vmem:[%s1174_s1 + $0x4c] sm:$0xf0]  ;;  %v757_v54 = vor.u32 %v830_v44, %v754_v45  ;;  %v836_v55 = vld [vmem:[%s1174_s1 + $0x4c] sm:$0xf]  ;;  %v712_v56 = vld [vmem:[%s1174_s1 + $0x50] sm:$0xf0] }
  0x17   : > { %421 = vmatpush.bf16.msra.mxu2 %v769_v26  ;;  %435 = vmatpush.bf16.msra.mxu3 %v773_v27  ;;  %v744_v57 = vld [vmem:[%s1174_s1] sm:$0xf]  ;;  %v829_v58 = vld [vmem:[%s1174_s1 + $0x4] sm:$0xf0]  ;;  %v828_v59 = vld [vmem:[%s1174_s1 + $0x4] sm:$0xf]  ;;  %s1077_s24 = scalar_lea.vmem %s1173_s0, %s859_s6  ;;  %v711_v61 = vor.u32 %v837_v52, %v710_v51  ;;  %v715_v2 = vor.u32 %v836_v55, %v712_v56 }
  0x18   : > { %v746_v60 = vld [vmem:[%s1174_s1 + $0x8] sm:$0xf0]  ;;  %v498_v62 = vpack.c.b16 %v488_v47, %v488_v47  ;;  %v499_v63 = vpack.c.b16 %v489_v48, %v489_v48  ;;  %v853_v0 = vld [vmem:[%s1077_s24] sm:$0xff]   ;;  %v248_v1 = vld [vmem:[%s1077_s24 + $0x8] sm:$0x1]  ;;  %v745_v6 = vor.u32 %v829_v58, %v744_v57  ;;  %vm325_vm2 = vcmask 588800  }
  0x19   : > { %v264_v3 = vunpack.c.l.b16 %v248_v1  ;;  %v269_v4 = vshrl.u32 %v853_v0, 16  ;;  %v271_v5 = vshll.u32 %v853_v0, 16  ;;  %v749_v7 = vor.u32 %v828_v59, %v746_v60  ;;  %v811_v10 = vld [vmem:[%s1174_s1 + $0xc0] sm:$0xf]  ;;  %v851_v11 = vld [vmem:[%s1174_s1 + $0xc4] sm:$0xf0] }
  0x1a   : > { %341 = vmatpush.bf16.msra.mxu0 %v727_v34  ;;  %355 = vmatpush.bf16.msra.mxu1 %v731_v35  ;;  %v512_v12 = vsel %vm329_vm0, %v498_v62, 0  ;;  %v515_v13 = vsel %vm329_vm0, %v499_v63, 0  ;;  %v850_v14 = vld [vmem:[%s1174_s1 + $0xc4] sm:$0xf]  ;;  %v813_v15 = vld [vmem:[%s1174_s1 + $0xc8] sm:$0xf0]  ;;  %v812_v19 = vor.u32 %v851_v11, %v811_v10 }
  0x1b   : > { %422 = vmatpush.bf16.msra.mxu2 %v761_v39  ;;  %436 = vmatpush.bf16.msra.mxu3 %v765_v40  ;;  %v266_v8 = vpack.c.b16 %v264_v3, %v264_v3  ;;  %v273_v9 = vrot.slane %v271_v5, 1  ;;  %vm267_vm1 = vsmask.f32 7424  ;;  %v816_v20 = vor.u32 %v850_v14, %v813_v15  ;;  %v803_v21 = vld [vmem:[%s1174_s1 + $0xb0] sm:$0xf]  ;;  %s827_s11 = sshll.u32 %s1183_s17, 6 }
  0x1c   : > { %v849_v22 = vld [vmem:[%s1174_s1 + $0xb4] sm:$0xf0]  ;;  %v848_v23 = vld [vmem:[%s1174_s1 + $0xb4] sm:$0xf]  ;;  %v805_v24 = vld [vmem:[%s1174_s1 + $0xb8] sm:$0xf0]  ;;  %s1146_s14 = scalar_lea.vmem %s1177_s4, %s827_s11 }
  0x1d   : > { %v274_v16 = vor.u32 %v273_v9, %v269_v4  ;;  %v276_v17 = vshll.u32 %v266_v8, 16  ;;  %v804_v26 = vor.u32 %v849_v22, %v803_v21  ;;  %v808_v27 = vor.u32 %v848_v23, %v805_v24  ;;  %v795_v28 = vld [vmem:[%s1174_s1 + $0xa0] sm:$0xf]  ;;  %v847_v29 = vld [vmem:[%s1174_s1 + $0xa4] sm:$0xf0]  ;;  %s909_s17 = smov 64  }
  0x1e   : > { %342 = vmatpush.bf16.msra.mxu0 %v719_v49  ;;  %356 = vmatpush.bf16.msra.mxu1 %v723_v50  ;;  %v846_v30 = vld [vmem:[%s1174_s1 + $0xa4] sm:$0xf]  ;;  %v797_v31 = vld [vmem:[%s1174_s1 + $0xa8] sm:$0xf0]  ;;  %v857_v33 = vld [vmem:[%s1077_s24] sm:$0xe]  ;;  %v796_v34 = vor.u32 %v847_v29, %v795_v28 }
  0x1f   : > { %423 = vmatpush.bf16.msra.mxu2 %v753_v53  ;;  %437 = vmatpush.bf16.msra.mxu3 %v757_v54  ;;  %v278_v18 = vrot.slane %v276_v17, 1  ;;  %v856_v32 = vld [vmem:[%s1077_s24] sm:$0xf0]  ;;  %v800_v35 = vor.u32 %v846_v30, %v797_v31  ;;  %v787_v36 = vld [vmem:[%s1174_s1 + $0x90] sm:$0xf]  ;;  %v461_v44 = vrot.slane %v266_v8, 1 }
  0x20   : > { %v858_v37 = vor.u32 %v857_v33, %v856_v32  ;;  %v845_v38 = vld [vmem:[%s1174_s1 + $0x94] sm:$0xf0]  ;;  %v844_v39 = vld [vmem:[%s1174_s1 + $0x94] sm:$0xf]  ;;  %v789_v40 = vld [vmem:[%s1174_s1 + $0x98] sm:$0xf0] }
  0x21   : > { %v279_v25 = vsel %vm267_vm1, %v274_v16, %v278_v18  ;;  %v788_v41 = vor.u32 %v845_v38, %v787_v36  ;;  %v792_v42 = vor.u32 %v844_v39, %v789_v40  ;;  %vm459_vm3 = vcmask 1046528   ;;  %s559_s24 = sld [smem:[#allocation2]]  ;;  %v549_v52 = vld [vmem:[%s1175_s2] sm:$0x3] }
  0x22   : > { %343 = vmatpush.bf16.msra.mxu0 %v711_v61  ;;  %357 = vmatpush.bf16.msra.mxu1 %v715_v2  ;;  %v460_v43 = vrot.slane %v858_v37, 1  ;;  %v551_v55 = vperm.slane %v549_v52, 0  ;;  %v552_v56 = vperm.slane %v549_v52, 1  ;;  %vm573_vm4 = vcmask 523264  }
  0x23   : > { %424 = vmatpush.bf16.msra.mxu2 %v745_v6  ;;  %438 = vmatpush.bf16.msra.mxu3 %v749_v7 }
  0x24   : > { %v462_v45 = vsel %vm459_vm3, %v460_v43, %v461_v44 }
  0x25   : > { %740 = vmatmul.msk.bf16.vlgmr.msra.gmra.mxu0 %vm325_vm2, %v279_v25  ;;  %741 = vmatmul.msk.bf16.vlgmr.msra.gmra.mxu1 %vm325_vm2, %v279_v25 }
  0x26   : > { %520 = vmatpush.bf16.msrb.mxu0 %v512_v12  ;;  %534 = vmatpush.bf16.msrb.mxu1 %v515_v13 }
  0x27   : > { %774 = vmatmul.msk.bf16.vlgmr.msra.gmra.mxu2 %vm325_vm2, %v853_v0  ;;  %775 = vmatmul.msk.bf16.vlgmr.msra.gmra.mxu3 %vm325_vm2, %v853_v0  ;;  %v564_v61 = vstv %s559_s24 }
  0x2a   : > { %521 = vmatpush.bf16.msrb.mxu0 %v812_v19  ;;  %535 = vmatpush.bf16.msrb.mxu1 %v816_v20 }
  0x2e   : > { %522 = vmatpush.bf16.msrb.mxu0 %v804_v26  ;;  %536 = vmatpush.bf16.msrb.mxu1 %v808_v27 }
  0x32   : > { %523 = vmatpush.bf16.msrb.mxu0 %v796_v34  ;;  %537 = vmatpush.bf16.msrb.mxu1 %v800_v35 }
  0x36   : > { %524 = vmatpush.bf16.msrb.mxu0 %v788_v41  ;;  %538 = vmatpush.bf16.msrb.mxu1 %v792_v42 }
  0x39   : > { %817 = vmatmul.msk.bf16.vlgmr.msrb.gmra.mxu0 %vm325_vm2, %v462_v45  ;;  %818 = vmatmul.msk.bf16.vlgmr.msrb.gmra.mxu1 %vm325_vm2, %v462_v45 }
  0xa2   : > { %v345_v46 = vpop.f32.mrf.mxu0  ;;  %v359_v47 = vpop.f32.mrf.mxu1 }
  0xaa   : > { %v347_v48 = vpop.f32.mrf.mxu0  ;;  %v361_v49 = vpop.f32.mrf.mxu1 }
  0xab   : > { %v426_v50 = vpop.f32.mrf.mxu2  ;;  %v440_v51 = vpop.f32.mrf.mxu3 }
  0xac   : > { %v427_v53 = vadd.f32 %v426_v50, %v345_v46  ;;  %v441_v54 = vadd.f32 %v440_v51, %v359_v47 }
  0xb3   : > { %v428_v0 = vpop.f32.mrf.mxu2  ;;  %v442_v1 = vpop.f32.mrf.mxu3 }
  0xb4   : > { %v429_v4 = vadd.f32 %v428_v0, %v347_v48  ;;  %v443_v5 = vadd.f32 %v442_v1, %v361_v49 }
  0xb6   : > { %v526_v57 = vpop.f32.mrf.mxu0  ;;  %v540_v58 = vpop.f32.mrf.mxu1 }
  0xb7   : > { %v545_v59 = vadd.f32 %v526_v57, %v427_v53  ;;  %v546_v60 = vadd.f32 %v540_v58, %v441_v54 }
  0xb9   : > { %v555_v62 = vadd.f32 %v551_v55, %v545_v59  ;;  %v556_v63 = vadd.f32 %v552_v56, %v546_v60 }
  0xbb   : > { %vm561_vm5 = vcmp.ge.f32.partialorder %v556_v63, 0.0  ;;  %v566_v2 = vmul.f32 %v564_v61, %v556_v63  ;;  %vm560_vm6 = vcmp.ge.f32.partialorder %v555_v62, 0.0  ;;  %v565_v3 = vmul.f32 %v564_v61, %v555_v62 }
  0xbd   : > { %v570_v6 = vsel %vm561_vm5, %v556_v63, %v566_v2  ;;  %v569_v7 = vsel %vm560_vm6, %v555_v62, %v565_v3 }
  0xbe   : > { %592 = vrot.lane.b32.xlu1 %v570_v6, %s909_s17  ;;  %821 = vst.msk [vmem:[%s1146_s14 + $0x20] sm:$0xff] %vm573_vm4, %v570_v6  ;;  %v542_v8 = vpop.f32.mrf.mxu1  ;;  %578 = vrot.lane.b32.xlu0 %v569_v7, %s909_s17  ;;  %v528_v9 = vpop.f32.mrf.mxu0 }
  0xbf   : > { %v548_v10 = vadd.f32 %v542_v8, %v443_v5  ;;  %574 = vst.msk [vmem:[%s1146_s14] sm:$0xff] %vm573_vm4, %v569_v7  ;;  %v547_v11 = vadd.f32 %v528_v9, %v429_v4 }
  0xc1   : > { %v558_v12 = vadd.f32 %v552_v56, %v548_v10  ;;  %v557_v13 = vadd.f32 %v551_v55, %v547_v11 }
  0xc3   : > { %vm563_vm7 = vcmp.ge.f32.partialorder %v558_v12, 0.0  ;;  %v568_v14 = vmul.f32 %v564_v61, %v558_v12  ;;  %vm562_vm8 = vcmp.ge.f32.partialorder %v557_v13, 0.0  ;;  %v567_v15 = vmul.f32 %v564_v61, %v557_v13 }
  0xc5   : > { %v572_v16 = vsel %vm563_vm7, %v558_v12, %v568_v14  ;;  %v571_v17 = vsel %vm562_vm8, %v557_v13, %v567_v15 }
  0xc6   : > { %594 = vrot.lane.b32.xlu1 %v572_v16, %s909_s17  ;;  %822 = vst.msk [vmem:[%s1146_s14 + $0x28] sm:$0xff] %vm573_vm4, %v572_v16  ;;  %580 = vrot.lane.b32.xlu0 %v571_v17, %s909_s17 }
  0xc7   : > { %575 = vst.msk [vmem:[%s1146_s14 + $0x8] sm:$0xff] %vm573_vm4, %v571_v17 }
 0x130   : > { %v593_v18 = vpop.permute.xlu1 %592  ;;  %v579_v19 = vpop.permute.xlu0 %578 }
 0x131   : > { %823 = vst.msk [vmem:[%s1146_s14 + $0x30] sm:$0xff] %vm573_vm4, %v593_v18 }
 0x132   : > { %819 = vst.msk [vmem:[%s1146_s14 + $0x10] sm:$0xff] %vm573_vm4, %v579_v19 }
 0x138   : > { %v595_v20 = vpop.permute.xlu1 %594  ;;  %v581_v21 = vpop.permute.xlu0 %580 }
 0x139   : > { %824 = vst.msk [vmem:[%s1146_s14 + $0x38] sm:$0xff] %vm573_vm4, %v595_v20 }
 0x13a   : > { %820 = vst.msk [vmem:[%s1146_s14 + $0x18] sm:$0xff] %vm573_vm4, %v581_v21 }
 0x13b PF: > { %s15_s19 = sadd.s32 1, %s907_s19   ;;  %s1178_s17 = smov %s903_s18 }
 0x13c   : > { %p12_p5 = scmp.ge.s32.totalorder %s15_s19, 4   ;;  %s1179_s18 = smov %s1181_s3 }
 0x13e   :  { %14 = sbr.rel (!%p12_p5) target bundleno = 2 (0x2), region = 71 }

</bundles_post_ra>
